<compile_context>
chip_gen: v6e
topology: v6e:2x2x1
jax: 0.10.0
libtpu: 0.0.40
codegen_flags: <defaults>
</compile_context>

<pallas_src>
import jax
import jax.numpy as jnp
import numpy as np
from jax.experimental import pallas as pl
from jax.experimental.pallas import tpu as pltpu

_MIB = 1024 * 1024
# Per-grid-step VMEM budget used to size block_m.  The binding generation is
# v7x (64 MiB physical / 32 MiB default scoped): stay well under it.
_STEP_VMEM_BUDGET = 24 * _MIB
_BLOCK_M_CAP = 8192
_VMEM_LIMIT_CAP = 48 * _MIB   # headroom below v7x's 64 MiB physical VMEM


def _round_up(a: int, b: int) -> int:
    return ((a + b - 1) // b) * b


def _dmlp_kernel(x_ref, w1_ref, b1_ref, w2_ref, b2_ref, w3_ref, b3_ref, o_ref):
    cdt = w1_ref.dtype  # compute dtype fed to the MXU; accumulation is f32.
    # In-kernel cast (VPU, free relative to HBM) -> no wrapper-side HBM pass.
    x = x_ref[...].astype(cdt)
    # Linear1 + ReLU
    h1 = jnp.dot(x, w1_ref[...], preferred_element_type=jnp.float32)
    h1 = jnp.maximum(h1 + b1_ref[...], 0.0).astype(cdt)
    # Linear2 + ReLU
    h2 = jnp.dot(h1, w2_ref[...], preferred_element_type=jnp.float32)
    h2 = jnp.maximum(h2 + b2_ref[...], 0.0).astype(cdt)
    # Final Linear (no activation: MLP built with last_act=False)
    out = jnp.dot(h2, w3_ref[...], preferred_element_type=jnp.float32) + b3_ref[...]
    o_ref[...] = out.astype(o_ref.dtype)


def _vmem_model(D, H1, H2, C, x_isz, out_isz, c_isz):
    """Returns (fixed_bytes, per_row_bytes) of the per-grid-step VMEM use."""
    # Fixed: weights + biases (assume double-buffered by the pipeline).
    fixed = 2 * (D * H1 + H1 * H2 + H2 * C) * c_isz + 2 * (H1 + H2 + C) * 4
    # Per row: double-buffered x/out tile rows, the in-kernel compute-dtype
    # copy of x, and the f32 matmul results (+ compute-dtype copies) of h1/h2.
    extra = c_isz if c_isz != 4 else 0
    per_row = (2 * D * x_isz + 2 * C * out_isz
               + (D * c_isz if c_isz != x_isz else 0)
               + H1 * (4 + extra) + H2 * (4 + extra))
    return fixed, per_row


def _pick_block_m(N, D, H1, H2, C, x_isz, out_isz, c_isz, align):
    fixed, per_row = _vmem_model(D, H1, H2, C, x_isz, out_isz, c_isz)
    # Largest aligned block that fits the per-step VMEM budget (<= 8192 rows).
    fit = max(align, ((_STEP_VMEM_BUDGET - fixed) // max(per_row, 1)) // align * align)
    cap = min(_BLOCK_M_CAP, fit)
    # Aim for >= 4 grid steps when N allows it: v7x's two TensorCores each get
    # >= 2 steps (megacore sharding + per-core pipelining).  Large N saturates
    # at the VMEM-derived cap instead.
    target = _round_up(max(1, -(-N // 4)), align)
    return int(max(align, min(cap, target)))


def dmlp_forward(x, params, *, block_m=None, compute_dtype=None):
    """Fused DMLP forward on TPU via Pallas.

    x: (N, D) in its stored dtype (no wrapper-side cast/pad/slice passes).
    params: dict with w1 (D,H1), b1 (1,H1), w2 (H1,H2), b2 (1,H2),
            w3 (H2,C), b3 (1,C).  Weights stored (in, out): y = x @ W + b
            (equivalent to torch's x @ W_t.T + b).
    compute_dtype: dtype fed to the MXU; the cast happens inside the kernel.
            Defaults to x.dtype (torch semantics).  jnp.bfloat16 is strongly
            recommended on v5e/v6e/v7x (fast MXU path, halves h1/h2 VMEM
            traffic); accumulation is always f32 via preferred_element_type,
            so accuracy impact is small.
    """
    N, D = x.shape
    H1 = params["w1"].shape[1]
    H2 = params["w2"].shape[1]
    C = params["w3"].shape[1]
    out_dtype = x.dtype

    if compute_dtype is None:
        compute_dtype = x.dtype
    c_isz = np.dtype(compute_dtype).itemsize
    x_isz = np.dtype(x.dtype).itemsize
    out_isz = np.dtype(out_dtype).itemsize
    # Sublane packing: 8 rows per vreg for 4-byte dtypes, 16 for 2-byte, ...
    align = {4: 8, 2: 16, 1: 32}.get(c_isz, 8)

    if block_m is None:
        block_m = _pick_block_m(N, D, H1, H2, C, x_isz, out_isz, c_isz, align)
    block_m = _round_up(max(int(block_m), align), align)

    # Ragged N: partial final block.  OOB input rows are garbage, OOB output
    # rows are dropped by masked writeback; per-row independence makes this
    # safe (no cross-row reductions in this forward).
    grid = (pl.cdiv(N, block_m),)

    # Weights/biases are tiny (~13K params for the default config); casting
    # them here is negligible (and typically done once at model setup).
    w1 = params["w1"].astype(compute_dtype)
    w2 = params["w2"].astype(compute_dtype)
    w3 = params["w3"].astype(compute_dtype)
    # Biases stay f32: added post-accumulation, negligible traffic.
    b1 = params["b1"].astype(jnp.float32)
    b2 = params["b2"].astype(jnp.float32)
    b3 = params["b3"].astype(jnp.float32)

    fixed, per_row = _vmem_model(D, H1, H2, C, x_isz, out_isz, c_isz)
    est = fixed + block_m * per_row
    vmem_limit = int(min(_VMEM_LIMIT_CAP, max(20 * _MIB, (3 * est) // 2)))

    # Grid-resident blocks (constant block index across the grid).
    res = lambda shape: pl.BlockSpec(shape, lambda i: (0, 0))

    fn = pl.pallas_call(
        _dmlp_kernel,
        out_shape=jax.ShapeDtypeStruct((N, C), out_dtype),
        grid_spec=pltpu.PrefetchScalarGridSpec(
            num_scalar_prefetch=0,
            grid=grid,
            in_specs=[
                pl.BlockSpec((block_m, D), lambda i: (i, 0)),  # x row tile
                res((D, H1)),   # w1
                res((1, H1)),   # b1
                res((H1, H2)),  # w2
                res((1, H2)),   # b2
                res((H2, C)),   # w3
                res((1, C)),    # b3
            ],
            out_specs=pl.BlockSpec((block_m, C), lambda i: (i, 0)),
        ),
        compiler_params=pltpu.CompilerParams(
            dimension_semantics=("parallel",),
            vmem_limit_bytes=vmem_limit,
        ),
    )
    # No block_until_ready here: keep dispatch asynchronous.
    return fn(x, w1, b1, w2, b2, w3, b3)


def init_dmlp_params(key, D, C, mlp_dim=(128, 64), dtype=jnp.float32):
    """Deterministic parameter init mimicking torch.nn.Linear default
    (uniform in [-1/sqrt(fan_in), 1/sqrt(fan_in)])."""
    dims = [D] + list(mlp_dim) + [C]
    params = {}
    keys = jax.random.split(key, 2 * (len(dims) - 1))
    for li in range(len(dims) - 1):
        fan_in, fan_out = dims[li], dims[li + 1]
        bound = 1.0 / float(np.sqrt(fan_in))
        w = jax.random.uniform(keys[2 * li], (fan_in, fan_out),
                               minval=-bound, maxval=bound, dtype=dtype)
        b = jax.random.uniform(keys[2 * li + 1], (1, fan_out),
                               minval=-bound, maxval=bound, dtype=dtype)
        params[f"w{li + 1}"] = w
        params[f"b{li + 1}"] = b
    return params


def dmlp_reference(x, p, compute_dtype=None):
    """Pure-JAX reference with the same cast/accumulation scheme."""
    if compute_dtype is None:
        compute_dtype = x.dtype
    xc = x.astype(compute_dtype)
    w1 = p["w1"].astype(compute_dtype)
    w2 = p["w2"].astype(compute_dtype)
    w3 = p["w3"].astype(compute_dtype)
    b1 = p["b1"].astype(jnp.float32)
    b2 = p["b2"].astype(jnp.float32)
    b3 = p["b3"].astype(jnp.float32)
    h1 = jnp.maximum(
        jnp.dot(xc, w1, preferred_element_type=jnp.float32) + b1, 0.0
    ).astype(compute_dtype)
    h2 = jnp.maximum(
        jnp.dot(h1, w2, preferred_element_type=jnp.float32) + b2, 0.0
    ).astype(compute_dtype)
    out = jnp.dot(h2, w3, preferred_element_type=jnp.float32) + b3
    return out.astype(x.dtype)


if __name__ == "__main__":
    # Use true f32 matmuls for the f32 reference comparison (both the kernel
    # trace and the reference pick this up), so the f32 check can be tight.
    jax.config.update("jax_default_matmul_precision", "highest")

    # Small shapes consistent with DMLP defaults: D input features, C classes,
    # hidden dims [128, 64].
    D, C = 32, 4
    key = jax.random.PRNGKey(0)
    kx1, kx2, kp = jax.random.split(key, 3)
    params = init_dmlp_params(kp, D, C, mlp_dim=(128, 64))

    # --- Case 1: tiny batch, f32 compute, single grid step ---
    x1 = jax.random.normal(kx1, (8, D), dtype=jnp.float32)
    y1 = jax.block_until_ready(dmlp_forward(x1, params))
    r1 = dmlp_reference(x1, params)
    assert y1.shape == (8, C)
    assert jnp.allclose(y1, r1, atol=1e-4, rtol=1e-4), "f32 mismatch vs reference"

    # --- Case 2: ragged batch (300 rows, not a multiple of block_m), 4-step
    #     grid, bf16 MXU inputs / f32 accumulation, cast done in-kernel ---
    x2 = jax.random.normal(kx2, (300, D), dtype=jnp.float32)
    y2 = jax.block_until_ready(
        dmlp_forward(x2, params, compute_dtype=jnp.bfloat16))
    r2 = dmlp_reference(x2, params, compute_dtype=jnp.bfloat16)
    assert y2.shape == (300, C)
    assert jnp.allclose(y2, r2, atol=2e-2, rtol=2e-2), "bf16 mismatch vs reference"

    print("KERNEL_OK")
</pallas_src>

<mosaic_0001>
module attributes {stable_mosaic.version = 11 : i64} {
  func.func @_dmlp_kernel(%arg0: i32, %arg1: memref<8x32xf32, #tpu.memory_space<vmem>>, %arg2: memref<32x128xf32, #tpu.memory_space<vmem>>, %arg3: memref<1x128xf32, #tpu.memory_space<vmem>>, %arg4: memref<128x64xf32, #tpu.memory_space<vmem>>, %arg5: memref<1x64xf32, #tpu.memory_space<vmem>>, %arg6: memref<64x4xf32, #tpu.memory_space<vmem>>, %arg7: memref<1x4xf32, #tpu.memory_space<vmem>>, %arg8: memref<8x4xf32, #tpu.memory_space<vmem>>) attributes {dimension_semantics = [#tpu.dimension_semantics<parallel>], iteration_bounds = array<i64: 1>, scalar_prefetch = 0 : i64, scratch_operands = 0 : i64, tpu.core_type = #tpu.core_type<tc>, window_params = [{transform_indices = @transform_0, window_bounds = array<i64: 8, 32>}, {pipeline_mode = #tpu.pipeline_mode<synchronous>, transform_indices = @transform_1, window_bounds = array<i64: 32, 128>}, {pipeline_mode = #tpu.pipeline_mode<synchronous>, transform_indices = @transform_2, window_bounds = array<i64: 1, 128>}, {pipeline_mode = #tpu.pipeline_mode<synchronous>, transform_indices = @transform_3, window_bounds = array<i64: 128, 64>}, {pipeline_mode = #tpu.pipeline_mode<synchronous>, transform_indices = @transform_4, window_bounds = array<i64: 1, 64>}, {pipeline_mode = #tpu.pipeline_mode<synchronous>, transform_indices = @transform_5, window_bounds = array<i64: 64, 4>}, {pipeline_mode = #tpu.pipeline_mode<synchronous>, transform_indices = @transform_6, window_bounds = array<i64: 1, 4>}, {transform_indices = @transform_7, window_bounds = array<i64: 8, 4>}]} {
    %c0 = arith.constant 0 : index
    %c0_0 = arith.constant 0 : index
    %0 = vector.load %arg1[%c0, %c0_0] : memref<8x32xf32, #tpu.memory_space<vmem>>, vector<8x32xf32>
    %c0_1 = arith.constant 0 : index
    %c0_2 = arith.constant 0 : index
    %1 = vector.load %arg2[%c0_1, %c0_2] : memref<32x128xf32, #tpu.memory_space<vmem>>, vector<32x128xf32>
    %cst = arith.constant dense<0.000000e+00> : vector<8x128xf32>
    %2 = tpu.matmul %0, %1, %cst {dimension_numbers = #tpu.dot_dimension_numbers<[1], [0], [0], [1], [0, 0, 1, 1], [], []>, precision = #tpu.contract_precision<fp32>} : vector<8x32xf32>, vector<32x128xf32>, vector<8x128xf32> -> vector<8x128xf32>
    %c0_3 = arith.constant 0 : index
    %c0_4 = arith.constant 0 : index
    %3 = vector.load %arg3[%c0_3, %c0_4] : memref<1x128xf32, #tpu.memory_space<vmem>>, vector<1x128xf32>
    %4 = vector.broadcast %3 : vector<1x128xf32> to vector<8x128xf32>
    %5 = arith.addf %2, %4 : vector<8x128xf32>
    %cst_5 = arith.constant 0.000000e+00 : f32
    %6 = vector.broadcast %cst_5 : f32 to vector<8x128xf32>
    %7 = arith.maximumf %5, %6 : vector<8x128xf32>
    %c0_6 = arith.constant 0 : index
    %c0_7 = arith.constant 0 : index
    %8 = vector.load %arg4[%c0_6, %c0_7] : memref<128x64xf32, #tpu.memory_space<vmem>>, vector<128x64xf32>
    %cst_8 = arith.constant dense<0.000000e+00> : vector<8x64xf32>
    %9 = tpu.matmul %7, %8, %cst_8 {dimension_numbers = #tpu.dot_dimension_numbers<[1], [0], [0], [1], [0, 0, 1, 1], [], []>, precision = #tpu.contract_precision<fp32>} : vector<8x128xf32>, vector<128x64xf32>, vector<8x64xf32> -> vector<8x64xf32>
    %c0_9 = arith.constant 0 : index
    %c0_10 = arith.constant 0 : index
    %10 = vector.load %arg5[%c0_9, %c0_10] : memref<1x64xf32, #tpu.memory_space<vmem>>, vector<1x64xf32>
    %11 = vector.broadcast %10 : vector<1x64xf32> to vector<8x64xf32>
    %12 = arith.addf %9, %11 : vector<8x64xf32>
    %cst_11 = arith.constant 0.000000e+00 : f32
    %13 = vector.broadcast %cst_11 : f32 to vector<8x64xf32>
    %14 = arith.maximumf %12, %13 : vector<8x64xf32>
    %c0_12 = arith.constant 0 : index
    %c0_13 = arith.constant 0 : index
    %15 = vector.load %arg6[%c0_12, %c0_13] : memref<64x4xf32, #tpu.memory_space<vmem>>, vector<64x4xf32>
    %cst_14 = arith.constant dense<0.000000e+00> : vector<8x4xf32>
    %16 = tpu.matmul %14, %15, %cst_14 {dimension_numbers = #tpu.dot_dimension_numbers<[1], [0], [0], [1], [0, 0, 1, 1], [], []>, precision = #tpu.contract_precision<fp32>} : vector<8x64xf32>, vector<64x4xf32>, vector<8x4xf32> -> vector<8x4xf32>
    %c0_15 = arith.constant 0 : index
    %c0_16 = arith.constant 0 : index
    %17 = vector.load %arg7[%c0_15, %c0_16] : memref<1x4xf32, #tpu.memory_space<vmem>>, vector<1x4xf32>
    %18 = vector.broadcast %17 : vector<1x4xf32> to vector<8x4xf32>
    %19 = arith.addf %16, %18 : vector<8x4xf32>
    %c0_17 = arith.constant 0 : index
    %c0_18 = arith.constant 0 : index
    %20 = vector.load %arg8[%c0_17, %c0_18] : memref<8x4xf32, #tpu.memory_space<vmem>>, vector<8x4xf32>
    tpu.vector_store %arg8[%c0_17, %c0_18], %19 {strides = array<i32>} : memref<8x4xf32, #tpu.memory_space<vmem>>, vector<8x4xf32>,
    return
  }
  func.func @transform_0(%arg0: i32) -> (i32, i32) {
    %c0_i32 = arith.constant 0 : i32
    %c0_i32_0 = arith.constant 0 : i32
    return %arg0, %c0_i32 : i32, i32
  }
  func.func @transform_1(%arg0: i32) -> (i32, i32) {
    %c0_i32 = arith.constant 0 : i32
    %c0_i32_0 = arith.constant 0 : i32
    %c0_i32_1 = arith.constant 0 : i32
    return %c0_i32, %c0_i32_0 : i32, i32
  }
  func.func @transform_2(%arg0: i32) -> (i32, i32) {
    %c0_i32 = arith.constant 0 : i32
    %c0_i32_0 = arith.constant 0 : i32
    %c0_i32_1 = arith.constant 0 : i32
    return %c0_i32, %c0_i32_0 : i32, i32
  }
  func.func @transform_3(%arg0: i32) -> (i32, i32) {
    %c0_i32 = arith.constant 0 : i32
    %c0_i32_0 = arith.constant 0 : i32
    %c0_i32_1 = arith.constant 0 : i32
    return %c0_i32, %c0_i32_0 : i32, i32
  }
  func.func @transform_4(%arg0: i32) -> (i32, i32) {
    %c0_i32 = arith.constant 0 : i32
    %c0_i32_0 = arith.constant 0 : i32
    %c0_i32_1 = arith.constant 0 : i32
    return %c0_i32, %c0_i32_0 : i32, i32
  }
  func.func @transform_5(%arg0: i32) -> (i32, i32) {
    %c0_i32 = arith.constant 0 : i32
    %c0_i32_0 = arith.constant 0 : i32
    %c0_i32_1 = arith.constant 0 : i32
    return %c0_i32, %c0_i32_0 : i32, i32
  }
  func.func @transform_6(%arg0: i32) -> (i32, i32) {
    %c0_i32 = arith.constant 0 : i32
    %c0_i32_0 = arith.constant 0 : i32
    %c0_i32_1 = arith.constant 0 : i32
    return %c0_i32, %c0_i32_0 : i32, i32
  }
  func.func @transform_7(%arg0: i32) -> (i32, i32) {
    %c0_i32 = arith.constant 0 : i32
    %c0_i32_0 = arith.constant 0 : i32
    return %arg0, %c0_i32 : i32, i32
  }
}

</mosaic_0001>

<bundles_post_ra>
// kernel: tpu_custom_call.1
= control target key start
LH: loop header
LB: loop body
LE: loop exit
PB: predicated region body
PF: predicated region fallthrough
CT: control target
= control target key end

     0   :  { %vm38_vm0 = vcmask 261120   ;;  %v2336_v0 = vmov 0.0   ;;  %vm2337_vm1 = vmmov 0   ;;  %vm1208_vm2 = vcmask 523264   ;;  %s3108_s1 = inlined_call_operand.vmem [shape: f32[32,128], index: 1, kind: input, shape index: {}]   ;;  %s3109_s0 = inlined_call_operand.vmem [shape: f32[8,32], index: 0, kind: input, shape index: {}]   ;;  %s3110_s3 = inlined_call_operand.vmem [shape: f32[128,64], index: 3, kind: input, shape index: {}]   ;;  %s3111_s2 = inlined_call_operand.vmem [shape: f32[1,128], index: 2, kind: input, shape index: {}]   ;;  %s3112_s5 = inlined_call_operand.vmem [shape: f32[64,4], index: 5, kind: input, shape index: {}]   ;;  %s3113_s4 = inlined_call_operand.vmem [shape: f32[1,64], index: 4, kind: input, shape index: {}]   ;;  %s3114_s6 = inlined_call_operand.vmem [shape: f32[1,4], index: 6, kind: input, shape index: {}]   ;;  %s3115_s7 = inlined_call_operand.vmem [shape: f32[8,4], index: 7, kind: output, shape index: {}]  }
   0x1   :  { %1944 = vmatprep.subr.mxu0 %v2336_v0  ;;  %v30_v1 = vld [vmem:[%s3108_s1 + $0x18] sm:$0xff]  ;;  %v29_v2 = vld [vmem:[%s3108_s1 + $0x10] sm:$0xff]  ;;  %v28_v3 = vld [vmem:[%s3108_s1 + $0x8] sm:$0xff]  ;;  %1955 = vmatprep.subr.mxu1 %v2336_v0  ;;  %vm1749_vm3 = vcmask 31744  }
   0x2   :  { %v2389_v4 = vand.u32 4294901760, %v30_v1  ;;  %v2391_v5 = vand.u32 4294901760, %v29_v2  ;;  %v2393_v6 = vand.u32 4294901760, %v28_v3  ;;  %v27_v7 = vld [vmem:[%s3108_s1] sm:$0xff]  ;;  %1952 = vmatprep.mubr.msk.f32.mxu0 %vm2337_vm1, %v2336_v0  ;;  %1963 = vmatprep.mubr.msk.f32.mxu1 %vm2337_vm1, %v2336_v0  ;;  %v543_v32 = vld [vmem:[%s3110_s3 + $0x78] sm:$0xff]  ;;  %v542_v33 = vld [vmem:[%s3110_s3 + $0x70] sm:$0xff] }
   0x3   :  { %v26_v8 = vld [vmem:[%s3109_s0] sm:$0xff]  ;;  %v2405_v9 = vand.u32 4294901760, %v27_v7  ;;  %v2452_v34 = vand.u32 4294901760, %v543_v32  ;;  %v541_v35 = vld [vmem:[%s3110_s3 + $0x68] sm:$0xff]  ;;  %v2462_v36 = vand.u32 4294901760, %v542_v33  ;;  %v539_v52 = vld [vmem:[%s3110_s3 + $0x58] sm:$0xff] }
   0x4   :  { %v40_v10 = vsel %vm38_vm0, %v26_v8, 0  ;;  %1945 = vmatpush3.msra.mxu0 %v2389_v4  ;;  %v147_v11 = vsub.f32 %v30_v1, %v2389_v4  ;;  %v154_v13 = vsub.f32 %v29_v2, %v2391_v5  ;;  %v2414_v14 = vsub.f32 %v28_v3, %v2393_v6  ;;  %v540_v50 = vld [vmem:[%s3110_s3 + $0x60] sm:$0xff]  ;;  %v538_v55 = vld [vmem:[%s3110_s3 + $0x50] sm:$0xff]  ;;  %v537_v59 = vld [vmem:[%s3110_s3 + $0x48] sm:$0xff] }
   0x5   :  { %v2410_v12 = vand.u32 4294901760, %v40_v10  ;;  %1946 = vmatprep.subr.mxu0 %v2336_v0  ;;  %v2418_v15 = vsub.f32 %v27_v7, %v2405_v9  ;;  %v2468_v37 = vsub.f32 %v543_v32, %v2452_v34  ;;  %v2470_v38 = vand.u32 4294901760, %v541_v35  ;;  %v536_v1 = vld [vmem:[%s3110_s3 + $0x40] sm:$0xff]  ;;  %v535_v7 = vld [vmem:[%s3110_s3 + $0x38] sm:$0xff] }
   0x6   :  { %1947 = vmatpush3.msra.mxu0 %v2391_v5  ;;  %v148_v16 = vand.u32 4294901760, %v147_v11  ;;  %v155_v18 = vand.u32 4294901760, %v154_v13  ;;  %v162_v19 = vand.u32 4294901760, %v2414_v14  ;;  %v2476_v39 = vsub.f32 %v542_v33, %v2462_v36 }
   0x7   :  { %v2422_v17 = vsub.f32 %v40_v10, %v2410_v12  ;;  %1948 = vmatprep.subr.mxu0 %v2336_v0  ;;  %v169_v20 = vand.u32 4294901760, %v2418_v15  ;;  %v645_v40 = vand.u32 4294901760, %v2468_v37  ;;  %v2485_v41 = vsub.f32 %v541_v35, %v2470_v38 }
   0x8   :  { %1949 = vmatpush3.msra.mxu0 %v2393_v6  ;;  %v149_v21 = vsub.f32 %v147_v11, %v148_v16  ;;  %v156_v23 = vsub.f32 %v154_v13, %v155_v18  ;;  %v163_v24 = vsub.f32 %v2414_v14, %v162_v19  ;;  %v652_v42 = vand.u32 4294901760, %v2476_v39 }
   0x9   :  { %v113_v22 = vand.u32 4294901760, %v2422_v17  ;;  %1950 = vmatprep.subr.mxu0 %v2336_v0  ;;  %v170_v28 = vsub.f32 %v2418_v15, %v169_v20  ;;  %v646_v43 = vsub.f32 %v2468_v37, %v645_v40  ;;  %v659_v44 = vand.u32 4294901760, %v2485_v41 }
   0xa   :  { %1951 = vmatpush3.msra.mxu0 %v2405_v9  ;;  %v150_v25 = vand.u32 4294901760, %v149_v21  ;;  %v157_v27 = vand.u32 4294901760, %v156_v23  ;;  %v164_v30 = vand.u32 4294901760, %v163_v24  ;;  %v653_v45 = vsub.f32 %v2476_v39, %v652_v42 }
   0xb   :  { %v114_v26 = vsub.f32 %v2422_v17, %v113_v22  ;;  %1966 = vmatprep.subr.mxu0 %v2336_v0  ;;  %v171_v31 = vand.u32 4294901760, %v170_v28  ;;  %v647_v46 = vand.u32 4294901760, %v646_v43  ;;  %v660_v47 = vsub.f32 %v2485_v41, %v659_v44 }
   0xc   :  { %1956 = vmatpush3.msra.mxu1 %v150_v25  ;;  %v654_v48 = vand.u32 4294901760, %v653_v45  ;;  %v2533_v51 = vand.u32 4294901760, %v540_v50  ;;  %v2541_v54 = vand.u32 4294901760, %v539_v52  ;;  %v2552_v58 = vand.u32 4294901760, %v538_v55  ;;  %v532_v25 = vld [vmem:[%s3110_s3 + $0x20] sm:$0xff] }
   0xd   :  { %v115_v29 = vand.u32 4294901760, %v114_v26  ;;  %1957 = vmatprep.subr.mxu1 %v2336_v0  ;;  %v661_v49 = vand.u32 4294901760, %v660_v47  ;;  %v2566_v63 = vand.u32 4294901760, %v537_v59 }
   0xe   :  { %1958 = vmatpush3.msra.mxu1 %v157_v27  ;;  %v2539_v53 = vsub.f32 %v540_v50, %v2533_v51  ;;  %v2550_v57 = vsub.f32 %v539_v52, %v2541_v54  ;;  %v2564_v62 = vsub.f32 %v538_v55, %v2552_v58  ;;  %v529_v55 = vld [vmem:[%s3110_s3 + $0x8] sm:$0xff] }
   0xf   :  { %1953 = vmatmul.mubr.f32.vlgmr.msra.gmra.mxu0 %v115_v29  ;;  %1959 = vmatprep.subr.mxu1 %v2336_v0  ;;  %v2638_v29 = vand.u32 4294901760, %v532_v25 }
  0x10   :  { %1967 = vmatpush3.msra.mxu0 %v147_v11  ;;  %1960 = vmatpush3.msra.mxu1 %v164_v30  ;;  %v666_v56 = vand.u32 4294901760, %v2539_v53  ;;  %v673_v61 = vand.u32 4294901760, %v2550_v57  ;;  %v2591_v11 = vand.u32 4294901760, %v535_v7 }
  0x11   :  { %1968 = vmatprep.subr.mxu0 %v2336_v0  ;;  %1961 = vmatprep.subr.mxu1 %v2336_v0  ;;  %v2651_v43 = vsub.f32 %v532_v25, %v2638_v29 }
  0x12   :  { %1969 = vmatpush3.msra.mxu0 %v154_v13  ;;  %1962 = vmatpush3.msra.mxu1 %v171_v31  ;;  %v667_v60 = vsub.f32 %v2539_v53, %v666_v56  ;;  %v674_v3 = vsub.f32 %v2550_v57, %v673_v61  ;;  %v534_v13 = vld [vmem:[%s3110_s3 + $0x30] sm:$0xff]  ;;  %v531_v31 = vld [vmem:[%s3110_s3 + $0x18] sm:$0xff] }
  0x13   :  { %1970 = vmatprep.subr.mxu0 %v2336_v0  ;;  %1964 = vmatmul.mubr.f32.vlgmr.msra.gmra.mxu1 %v2410_v12  ;;  %v2654_v45 = vand.u32 4294901760, %v531_v31 }
  0x14   :  { %1971 = vmatpush3.msra.mxu0 %v2414_v14  ;;  %1977 = vmatprep.subr.mxu1 %v2336_v0  ;;  %v668_v2 = vand.u32 4294901760, %v667_v60  ;;  %v675_v8 = vand.u32 4294901760, %v674_v3 }
  0x15   :  { %1972 = vmatprep.subr.mxu0 %v2336_v0  ;;  %1978 = vmatpush3.msra.mxu1 %v2389_v4  ;;  %v2669_v52 = vsub.f32 %v531_v31, %v2654_v45 }
  0x16   :  { %1973 = vmatpush3.msra.mxu0 %v2418_v15  ;;  %1974 = vmatprep.mubr.msk.f32.mxu0 %vm2337_vm1, %v2336_v0 }
  0x17   :  { %1979 = vmatprep.subr.mxu1 %v2336_v0  ;;  %1988 = vmatprep.subr.mxu0 %v2336_v0  ;;  %v3119_v3 = vand.u32 4294901760, %v2669_v52 }
  0x18   :  { %1975 = vmatmul.mubr.f32.vlgmr.msra.gmra.mxu0 %v2422_v17  ;;  %1980 = vmatpush3.msra.mxu1 %v2391_v5  ;;  %v2607_v17 = vand.u32 4294901760, %v534_v13 }
  0x19   :  { %1989 = vmatpush3.msra.mxu0 %v148_v16  ;;  %1981 = vmatprep.subr.mxu1 %v2336_v0  ;;  %v2605_v16 = vsub.f32 %v535_v7, %v2591_v11  ;;  %v528_v7 = vld [vmem:[%s3110_s3] sm:$0xff] }
  0x1a   :  { %1990 = vmatprep.subr.mxu0 %v2336_v0  ;;  %1982 = vmatpush3.msra.mxu1 %v2393_v6 }
  0x1b   :  { %1991 = vmatpush3.msra.mxu0 %v155_v18  ;;  %1983 = vmatprep.subr.mxu1 %v2336_v0  ;;  %v701_v21 = vand.u32 4294901760, %v2605_v16 }
  0x1c   :  { %1992 = vmatprep.subr.mxu0 %v2336_v0  ;;  %1984 = vmatpush3.msra.mxu1 %v2405_v9 }
  0x1d   :  { %1985 = vmatprep.mubr.msk.f32.mxu1 %vm2337_vm1, %v2336_v0  ;;  %1993 = vmatpush3.msra.mxu0 %v162_v19  ;;  %v533_v19 = vld [vmem:[%s3110_s3 + $0x28] sm:$0xff]  ;;  %v702_v26 = vsub.f32 %v2605_v16, %v701_v21 }
  0x1e   :  { %1986 = vmatmul.mubr.f32.vlgmr.msra.gmra.mxu1 %v113_v22  ;;  %1994 = vmatprep.subr.mxu0 %v2336_v0  ;;  %v2618_v22 = vsub.f32 %v534_v13, %v2607_v17  ;;  %v2620_v23 = vand.u32 4294901760, %v533_v19 }
  0x1f   :  { %1999 = vmatprep.subr.mxu1 %v2336_v0  ;;  %1995 = vmatpush3.msra.mxu0 %v169_v20  ;;  %v703_v32 = vand.u32 4294901760, %v702_v26 }
  0x20   :  { %1996 = vmatprep.mubr.msk.f32.mxu0 %vm2337_vm1, %v2336_v0  ;;  %2000 = vmatpush3.msra.mxu1 %v2389_v4  ;;  %v680_v4 = vand.u32 4294901760, %v2564_v62  ;;  %v708_v27 = vand.u32 4294901760, %v2618_v22  ;;  %v2636_v28 = vsub.f32 %v533_v19, %v2620_v23 }
  0x21   :  { %1997 = vmatmul.mubr.f32.vlgmr.msra.gmra.mxu0 %v2410_v12  ;;  %2001 = vmatprep.subr.mxu1 %v2336_v0 }
  0x22   :  { %2007 = vmatprep.mubr.msk.f32.mxu1 %vm2337_vm1, %v2336_v0  ;;  %2002 = vmatpush3.msra.mxu1 %v2391_v5  ;;  %v2578_v5 = vsub.f32 %v537_v59, %v2566_v63  ;;  %v709_v33 = vsub.f32 %v2618_v22, %v708_v27  ;;  %v3121_v35 = vand.u32 4294901760, %v2636_v28 }
  0x23   :  { %2010 = vmatprep.subr.mxu0 %v2336_v0  ;;  %2003 = vmatprep.subr.mxu1 %v2336_v0 }
  0x24   :  { %2011 = vmatpush3.msra.mxu0 %v2452_v34  ;;  %2004 = vmatpush3.msra.mxu1 %v2393_v6  ;;  %v2581_v6 = vand.u32 4294901760, %v536_v1  ;;  %v687_v10 = vand.u32 4294901760, %v2578_v5  ;;  %v710_v47 = vand.u32 4294901760, %v709_v33 }
  0x25   :  { %2012 = vmatprep.subr.mxu0 %v2336_v0  ;;  %2005 = vmatprep.subr.mxu1 %v2336_v0 }
  0x26   :  { %2013 = vmatpush3.msra.mxu0 %v2462_v36  ;;  %2006 = vmatpush3.msra.mxu1 %v2405_v9  ;;  %v681_v9 = vsub.f32 %v2564_v62, %v680_v4  ;;  %v688_v15 = vsub.f32 %v2578_v5, %v687_v10 }
  0x27   :  { %2014 = vmatprep.subr.mxu0 %v2336_v0  ;;  %2008 = vmatmul.mubr.f32.vlgmr.msra.gmra.mxu1 %v2410_v12  ;;  %v2595_v12 = vsub.f32 %v536_v1, %v2581_v6 }
  0x28   :  { %2045 = vmatprep.subr.mxu1 %v2336_v0  ;;  %2015 = vmatpush3.msra.mxu0 %v2470_v38  ;;  %v682_v14 = vand.u32 4294901760, %v681_v9  ;;  %v689_v20 = vand.u32 4294901760, %v688_v15  ;;  %v730_v15 = vsub.f32 %v2669_v52, %v3119_v3 }
  0x29   :  { %2046 = vmatpush3.msra.mxu1 %v647_v46  ;;  %2016 = vmatprep.subr.mxu0 %v2336_v0  ;;  %v694_v18 = vand.u32 4294901760, %v2595_v12  ;;  %v530_v46 = vld [vmem:[%s3110_s3 + $0x10] sm:$0xff] }
  0x2a   :  { %2047 = vmatprep.subr.mxu1 %v2336_v0  ;;  %2077 = vmatprep.mubr.msk.f32.mxu1 %vm2337_vm1, %v2336_v0  ;;  %v2665_v50 = vand.u32 4294901760, %v530_v46  ;;  %v731_v25 = vand.u32 4294901760, %v730_v15 }
  0x2b   :  { %2048 = vmatpush3.msra.mxu1 %v654_v48  ;;  %2042 = vmatprep.mubr.msk.f32.mxu0 %vm2337_vm1, %v2336_v0  ;;  %v695_v24 = vsub.f32 %v2595_v12, %v694_v18  ;;  %v716_v48 = vsub.f32 %v2636_v28, %v3121_v35 }
  0x2c   :  { %2049 = vmatprep.subr.mxu1 %v2336_v0  ;;  %2017 = vmatpush3.msra.mxu0 %v2533_v51  ;;  %v2680_v1 = vsub.f32 %v530_v46, %v2665_v50 }
  0x2d   :  { %2050 = vmatpush3.msra.mxu1 %v661_v49  ;;  %2018 = vmatprep.subr.mxu0 %v2336_v0  ;;  %v696_v30 = vand.u32 4294901760, %v695_v24  ;;  %v3120_v49 = vand.u32 4294901760, %v2651_v43  ;;  %v717_v59 = vand.u32 4294901760, %v716_v48 }
  0x2e   :  { %2051 = vmatprep.subr.mxu1 %v2336_v0  ;;  %2019 = vmatpush3.msra.mxu0 %v2541_v54  ;;  %v3118_v9 = vand.u32 4294901760, %v2680_v1 }
  0x2f   :  { %2020 = vmatprep.subr.mxu0 %v2336_v0  ;;  %2052 = vmatpush3.msra.mxu1 %v668_v2  ;;  %v723_v60 = vsub.f32 %v2651_v43, %v3120_v49  ;;  %v2682_v2 = vand.u32 4294901760, %v529_v55 }
  0x30   :  { %2021 = vmatpush3.msra.mxu0 %v2552_v58  ;;  %2053 = vmatprep.subr.mxu1 %v2336_v0  ;;  %v737_v19 = vsub.f32 %v2680_v1, %v3118_v9 }
  0x31   :  { %2022 = vmatprep.subr.mxu0 %v2336_v0  ;;  %2054 = vmatpush3.msra.mxu1 %v675_v8  ;;  %v724_v8 = vand.u32 4294901760, %v723_v60  ;;  %v2693_v13 = vsub.f32 %v529_v55, %v2682_v2 }
  0x32   :  { %2023 = vmatpush3.msra.mxu0 %v2566_v63  ;;  %2055 = vmatprep.subr.mxu1 %v2336_v0  ;;  %v738_v26 = vand.u32 4294901760, %v737_v19 }
  0x33   :  { %2024 = vmatprep.subr.mxu0 %v2336_v0  ;;  %2056 = vmatpush3.msra.mxu1 %v682_v14  ;;  %v2695_v14 = vand.u32 4294901760, %v528_v7 }
  0x34   :  { %2025 = vmatpush3.msra.mxu0 %v2581_v6  ;;  %2057 = vmatprep.subr.mxu1 %v2336_v0 }
  0x35   :  { %2026 = vmatprep.subr.mxu0 %v2336_v0  ;;  %2058 = vmatpush3.msra.mxu1 %v689_v20  ;;  %v3117_v20 = vand.u32 4294901760, %v2693_v13  ;;  %v2708_v24 = vsub.f32 %v528_v7, %v2695_v14 }
  0x36   :  { %2027 = vmatpush3.msra.mxu0 %v2591_v11  ;;  %2059 = vmatprep.subr.mxu1 %v2336_v0 }
  0x37   :  { %2028 = vmatprep.subr.mxu0 %v2336_v0  ;;  %2060 = vmatpush3.msra.mxu1 %v696_v30  ;;  %v744_v30 = vsub.f32 %v2693_v13, %v3117_v20  ;;  %v3116_v31 = vand.u32 4294901760, %v2708_v24 }
  0x38   :  { %2029 = vmatpush3.msra.mxu0 %v2607_v17  ;;  %2061 = vmatprep.subr.mxu1 %v2336_v0 }
  0x39   :  { %2030 = vmatprep.subr.mxu0 %v2336_v0  ;;  %2062 = vmatpush3.msra.mxu1 %v703_v32  ;;  %v745_v32 = vand.u32 4294901760, %v744_v30  ;;  %v751_v33 = vsub.f32 %v2708_v24, %v3116_v31 }
  0x3a   :  { %2031 = vmatpush3.msra.mxu0 %v2620_v23  ;;  %2063 = vmatprep.subr.mxu1 %v2336_v0 }
  0x3b   :  { %2032 = vmatprep.subr.mxu0 %v2336_v0  ;;  %2064 = vmatpush3.msra.mxu1 %v710_v47  ;;  %v752_v46 = vand.u32 4294901760, %v751_v33 }
  0x3c   :  { %2033 = vmatpush3.msra.mxu0 %v2638_v29  ;;  %2065 = vmatprep.subr.mxu1 %v2336_v0 }
  0x3d   :  { %2034 = vmatprep.subr.mxu0 %v2336_v0  ;;  %2066 = vmatpush3.msra.mxu1 %v717_v59  ;;  %v1755_v59 = vld [vmem:[%s3111_s2] ss:$0 sm:$0xff] }
  0x3e   :  { %2035 = vmatpush3.msra.mxu0 %v2654_v45  ;;  %2067 = vmatprep.subr.mxu1 %v2336_v0 }
  0x3f   :  { %2036 = vmatprep.subr.mxu0 %v2336_v0  ;;  %2068 = vmatpush3.msra.mxu1 %v724_v8 }
  0x40   :  { %2037 = vmatpush3.msra.mxu0 %v2665_v50  ;;  %2069 = vmatprep.subr.mxu1 %v2336_v0 }
  0x41   :  { %2038 = vmatprep.subr.mxu0 %v2336_v0  ;;  %2070 = vmatpush3.msra.mxu1 %v731_v25 }
  0x42   :  { %2039 = vmatpush3.msra.mxu0 %v2682_v2  ;;  %2071 = vmatprep.subr.mxu1 %v2336_v0 }
  0x43   :  { %2040 = vmatprep.subr.mxu0 %v2336_v0  ;;  %2072 = vmatpush3.msra.mxu1 %v738_v26 }
  0x44   :  { %2041 = vmatpush3.msra.mxu0 %v2695_v14  ;;  %2073 = vmatprep.subr.mxu1 %v2336_v0 }
  0x45   :  { %2080 = vmatprep.subr.mxu0 %v2336_v0  ;;  %2074 = vmatpush3.msra.mxu1 %v745_v32 }
  0x46   :  { %2075 = vmatprep.subr.mxu1 %v2336_v0 }
  0x47   :  { %2076 = vmatpush3.msra.mxu1 %v752_v46 }
  0x48   :  { %2115 = vmatprep.subr.mxu1 %v2336_v0 }
  0xcf   :  { %v117_v47 = vpop.f32.mrf.mxu0 }
  0xd0   :  { %v118_v8 = vadd.f32 %v1755_v59, %v117_v47 }
  0xd1   :  { %v1954_v48 = vpop.f32.mrf.mxu0 }
  0xd3   :  { %v208_v55 = vpop.f32.mrf.mxu1 }
  0xd4   :  { %v209_v19 = vadd.f32 %v208_v55, %v118_v8 }
  0xd5   :  { %v1965_v60 = vpop.f32.mrf.mxu1 }
  0xd8   :  { %v288_v7 = vpop.f32.mrf.mxu0 }
  0xd9   :  { %v289_v30 = vadd.f32 %v288_v7, %v209_v19 }
  0xda   :  { %v1976_v15 = vpop.f32.mrf.mxu0 }
  0xde   :  { %v365_v25 = vpop.f32.mrf.mxu1 }
  0xdf   :  { %v366_v33 = vadd.f32 %v365_v25, %v289_v30 }
  0xe0   :  { %v1987_v26 = vpop.f32.mrf.mxu1 }
  0xe1   :  { %v448_v32 = vpop.f32.mrf.mxu0 }
  0xe2   :  { %v449_v31 = vadd.f32 %v448_v32, %v366_v33 }
  0xe3   :  { %v1998_v46 = vpop.f32.mrf.mxu0 }
  0xe7   :  { %v523_v20 = vpop.f32.mrf.mxu1 }
  0xe8   :  { %v524_v9 = vadd.f32 %v523_v20, %v449_v31 }
  0xe9   :  { %v2009_v48 = vpop.f32.mrf.mxu1 }
  0xea   :  { %v527_v3 = vmax.f32 %v524_v9, 0.0 }
  0xec   :  { %v2728_v49 = vand.u32 4294901760, %v527_v3 }
  0xee   :  { %v2731_v35 = vsub.f32 %v527_v3, %v2728_v49  ;;  %2078 = vmatmul.mubr.f32.vlgmr.msra.gmra.mxu1 %v2728_v49 }
  0xef   :  { %2116 = vmatpush3.msra.mxu1 %v2452_v34  ;;  %2147 = vmatprep.mubr.msk.f32.mxu1 %vm2337_vm1, %v2336_v0 }
  0xf0   :  { %v634_v47 = vand.u32 4294901760, %v2731_v35  ;;  %2117 = vmatprep.subr.mxu1 %v2336_v0 }
  0xf1   :  { %2118 = vmatpush3.msra.mxu1 %v2462_v36 }
  0xf2   :  { %v635_v9 = vsub.f32 %v2731_v35, %v634_v47  ;;  %2119 = vmatprep.subr.mxu1 %v2336_v0 }
  0xf3   :  { %2120 = vmatpush3.msra.mxu1 %v2470_v38 }
  0xf4   :  { %2121 = vmatprep.subr.mxu1 %v2336_v0  ;;  %v636_v3 = vand.u32 4294901760, %v635_v9 }
  0xf5   :  { %2122 = vmatpush3.msra.mxu1 %v2533_v51 }
  0xf6   :  { %2123 = vmatprep.subr.mxu1 %v2336_v0  ;;  %2043 = vmatmul.mubr.f32.vlgmr.msra.gmra.mxu0 %v636_v3  ;;  %v1756_v3 = vld [vmem:[%s3113_s4] ss:$0 sm:$0xff] }
  0xf7   :  { %2081 = vmatpush3.msra.mxu0 %v2468_v37  ;;  %2124 = vmatpush3.msra.mxu1 %v2541_v54  ;;  %v3124_v37 = vand.u32 4294901760, %v2669_v52 }
  0xf8   :  { %2082 = vmatprep.subr.mxu0 %v2336_v0  ;;  %2125 = vmatprep.subr.mxu1 %v2336_v0 }
  0xf9   :  { %2083 = vmatpush3.msra.mxu0 %v2476_v39  ;;  %2126 = vmatpush3.msra.mxu1 %v2552_v58  ;;  %v3126_v39 = vand.u32 4294901760, %v2693_v13 }
  0xfa   :  { %2084 = vmatprep.subr.mxu0 %v2336_v0  ;;  %2127 = vmatprep.subr.mxu1 %v2336_v0 }
  0xfb   :  { %2085 = vmatpush3.msra.mxu0 %v2485_v41  ;;  %2128 = vmatpush3.msra.mxu1 %v2566_v63  ;;  %v1200_v41 = vld [vmem:[%s3112_s5 + $0x38] sm:$0xff] }
  0xfc   :  { %2086 = vmatprep.subr.mxu0 %v2336_v0  ;;  %2129 = vmatprep.subr.mxu1 %v2336_v0 }
  0xfd   :  { %2087 = vmatpush3.msra.mxu0 %v2539_v53  ;;  %2130 = vmatpush3.msra.mxu1 %v2581_v6 }
  0xfe   :  { %2088 = vmatprep.subr.mxu0 %v2336_v0  ;;  %2131 = vmatprep.subr.mxu1 %v2336_v0 }
  0xff   :  { %2089 = vmatpush3.msra.mxu0 %v2550_v57  ;;  %2132 = vmatpush3.msra.mxu1 %v2591_v11 }
 0x100   :  { %2090 = vmatprep.subr.mxu0 %v2336_v0  ;;  %2133 = vmatprep.subr.mxu1 %v2336_v0 }
 0x101   :  { %2091 = vmatpush3.msra.mxu0 %v2564_v62  ;;  %2134 = vmatpush3.msra.mxu1 %v2607_v17 }
 0x102   :  { %2092 = vmatprep.subr.mxu0 %v2336_v0  ;;  %2135 = vmatprep.subr.mxu1 %v2336_v0 }
 0x103   :  { %2093 = vmatpush3.msra.mxu0 %v2578_v5  ;;  %2136 = vmatpush3.msra.mxu1 %v2620_v23 }
 0x104   :  { %2094 = vmatprep.subr.mxu0 %v2336_v0  ;;  %2137 = vmatprep.subr.mxu1 %v2336_v0 }
 0x105   :  { %2095 = vmatpush3.msra.mxu0 %v2595_v12  ;;  %2138 = vmatpush3.msra.mxu1 %v2638_v29 }
 0x106   :  { %2096 = vmatprep.subr.mxu0 %v2336_v0  ;;  %2139 = vmatprep.subr.mxu1 %v2336_v0 }
 0x107   :  { %2097 = vmatpush3.msra.mxu0 %v2605_v16  ;;  %2140 = vmatpush3.msra.mxu1 %v2654_v45 }
 0x108   :  { %2098 = vmatprep.subr.mxu0 %v2336_v0  ;;  %2141 = vmatprep.subr.mxu1 %v2336_v0 }
 0x109   :  { %2099 = vmatpush3.msra.mxu0 %v2618_v22  ;;  %2142 = vmatpush3.msra.mxu1 %v2665_v50 }
 0x10a   :  { %2100 = vmatprep.subr.mxu0 %v2336_v0  ;;  %2143 = vmatprep.subr.mxu1 %v2336_v0 }
 0x10b   :  { %2101 = vmatpush3.msra.mxu0 %v2636_v28  ;;  %2144 = vmatpush3.msra.mxu1 %v2682_v2 }
 0x10c   :  { %2102 = vmatprep.subr.mxu0 %v2336_v0  ;;  %2145 = vmatprep.subr.mxu1 %v2336_v0 }
 0x10d   :  { %2103 = vmatpush3.msra.mxu0 %v2651_v43  ;;  %2146 = vmatpush3.msra.mxu1 %v2695_v14 }
 0x10e   :  { %2104 = vmatprep.subr.mxu0 %v2336_v0  ;;  %2148 = vmatmul.mubr.f32.vlgmr.msra.gmra.mxu1 %v634_v47 }
 0x10f   :  { %2185 = vmatprep.subr.mxu1 %v2336_v0  ;;  %2105 = vmatpush3.msra.mxu0 %v2669_v52  ;;  %v1193_v52 = vld [vmem:[%s3112_s5] sm:$0xff] }
 0x110   :  { %2186 = vmatpush3.msra.mxu1 %v2452_v34  ;;  %2106 = vmatprep.subr.mxu0 %v2336_v0  ;;  %v3122_v34 = vand.u32 4294901760, %v2636_v28 }
 0x111   :  { %2187 = vmatprep.subr.mxu1 %v2336_v0  ;;  %2107 = vmatpush3.msra.mxu0 %v2680_v1 }
 0x112   :  { %2188 = vmatpush3.msra.mxu1 %v2462_v36  ;;  %2108 = vmatprep.subr.mxu0 %v2336_v0  ;;  %v3123_v36 = vand.u32 4294901760, %v2651_v43 }
 0x113   :  { %2189 = vmatprep.subr.mxu1 %v2336_v0  ;;  %2109 = vmatpush3.msra.mxu0 %v2693_v13 }
 0x114   :  { %2190 = vmatpush3.msra.mxu1 %v2470_v38  ;;  %2110 = vmatprep.subr.mxu0 %v2336_v0  ;;  %v3125_v38 = vand.u32 4294901760, %v2680_v1 }
 0x115   :  { %2191 = vmatprep.subr.mxu1 %v2336_v0  ;;  %2111 = vmatpush3.msra.mxu0 %v2708_v24 }
 0x116   :  { %2112 = vmatprep.mubr.msk.f32.mxu0 %vm2337_vm1, %v2336_v0  ;;  %2192 = vmatpush3.msra.mxu1 %v2533_v51 }
 0x117   :  { %2113 = vmatmul.mubr.f32.vlgmr.msra.gmra.mxu0 %v2731_v35  ;;  %2150 = vmatprep.subr.mxu0 %v2336_v0 }
 0x118   :  { %2193 = vmatprep.subr.mxu1 %v2336_v0  ;;  %2151 = vmatpush3.msra.mxu0 %v645_v40  ;;  %v3127_v40 = vand.u32 4294901760, %v2708_v24 }
 0x119   :  { %2194 = vmatpush3.msra.mxu1 %v2541_v54  ;;  %2152 = vmatprep.subr.mxu0 %v2336_v0  ;;  %v1198_v54 = vld [vmem:[%s3112_s5 + $0x28] sm:$0xff] }
 0x11a   :  { %2195 = vmatprep.subr.mxu1 %v2336_v0  ;;  %2153 = vmatpush3.msra.mxu0 %v652_v42  ;;  %v2898_v42 = vand.u32 4294901760, %v1200_v41 }
 0x11b   :  { %2196 = vmatpush3.msra.mxu1 %v2552_v58  ;;  %2154 = vmatprep.subr.mxu0 %v2336_v0  ;;  %v2917_v58 = vand.u32 4294901760, %v1198_v54 }
 0x11c   :  { %2197 = vmatprep.subr.mxu1 %v2336_v0  ;;  %2155 = vmatpush3.msra.mxu0 %v659_v44  ;;  %v1199_v44 = vld [vmem:[%s3112_s5 + $0x30] sm:$0xff]  ;;  %v2904_v51 = vsub.f32 %v1200_v41, %v2898_v42 }
 0x11d   :  { %2198 = vmatpush3.msra.mxu1 %v2566_v63  ;;  %2156 = vmatprep.subr.mxu0 %v2336_v0  ;;  %v2906_v53 = vand.u32 4294901760, %v1199_v44 }
 0x11e   :  { %2199 = vmatprep.subr.mxu1 %v2336_v0  ;;  %2157 = vmatpush3.msra.mxu0 %v666_v56  ;;  %v1314_v56 = vand.u32 4294901760, %v2904_v51 }
 0x11f   :  { %2200 = vmatpush3.msra.mxu1 %v2581_v6  ;;  %2158 = vmatprep.subr.mxu0 %v2336_v0  ;;  %v2915_v57 = vsub.f32 %v1199_v44, %v2906_v53  ;;  %v1196_v6 = vld [vmem:[%s3112_s5 + $0x18] sm:$0xff] }
 0x120   :  { %2201 = vmatprep.subr.mxu1 %v2336_v0  ;;  %2159 = vmatpush3.msra.mxu0 %v673_v61  ;;  %v1197_v61 = vld [vmem:[%s3112_s5 + $0x20] sm:$0xff]  ;;  %v1315_v62 = vsub.f32 %v2904_v51, %v1314_v56 }
 0x121   :  { %2202 = vmatpush3.msra.mxu1 %v2591_v11  ;;  %2160 = vmatprep.subr.mxu0 %v2336_v0  ;;  %v1321_v63 = vand.u32 4294901760, %v2915_v57  ;;  %v2931_v5 = vand.u32 4294901760, %v1197_v61 }
 0x122   :  { %2203 = vmatprep.subr.mxu1 %v2336_v0  ;;  %2161 = vmatpush3.msra.mxu0 %v680_v4  ;;  %v2929_v4 = vsub.f32 %v1198_v54, %v2917_v58 }
 0x123   :  { %2204 = vmatpush3.msra.mxu1 %v2607_v17  ;;  %2162 = vmatprep.subr.mxu0 %v2336_v0  ;;  %v1322_v11 = vsub.f32 %v2915_v57, %v1321_v63  ;;  %v2943_v16 = vsub.f32 %v1197_v61, %v2931_v5  ;;  %v2946_v17 = vand.u32 4294901760, %v1196_v6 }
 0x124   :  { %2205 = vmatprep.subr.mxu1 %v2336_v0  ;;  %2163 = vmatpush3.msra.mxu0 %v687_v10  ;;  %v1316_v10 = vand.u32 4294901760, %v1315_v62  ;;  %v1328_v12 = vand.u32 4294901760, %v2929_v4 }
 0x125   :  { %2206 = vmatpush3.msra.mxu1 %v2620_v23  ;;  %2164 = vmatprep.subr.mxu0 %v2336_v0  ;;  %v1335_v23 = vand.u32 4294901760, %v2943_v16  ;;  %v2960_v28 = vsub.f32 %v1196_v6, %v2946_v17 }
 0x126   :  { %2207 = vmatprep.subr.mxu1 %v2336_v0  ;;  %2165 = vmatpush3.msra.mxu0 %v694_v18  ;;  %v1195_v18 = vld [vmem:[%s3112_s5 + $0x10] sm:$0xff]  ;;  %v1329_v22 = vsub.f32 %v2929_v4, %v1328_v12 }
 0x127   :  { %2208 = vmatpush3.msra.mxu1 %v2638_v29  ;;  %2166 = vmatprep.subr.mxu0 %v2336_v0  ;;  %v1194_v29 = vld [vmem:[%s3112_s5 + $0x8] sm:$0xff]  ;;  %v1336_v43 = vsub.f32 %v2943_v16, %v1335_v23 }
 0x128   :  { %2209 = vmatprep.subr.mxu1 %v2336_v0  ;;  %2167 = vmatpush3.msra.mxu0 %v701_v21  ;;  %v1323_v21 = vand.u32 4294901760, %v1322_v11  ;;  %v1330_v35 = vand.u32 4294901760, %v1329_v22 }
 0x129   :  { %2210 = vmatpush3.msra.mxu1 %v2654_v45  ;;  %2168 = vmatprep.subr.mxu0 %v2336_v0  ;;  %v1337_v1 = vand.u32 4294901760, %v1336_v43 }
 0x12a   :  { %2211 = vmatprep.subr.mxu1 %v2336_v0  ;;  %2169 = vmatpush3.msra.mxu0 %v708_v27  ;;  %v2956_v27 = vand.u32 4294901760, %v1195_v18 }
 0x12b   :  { %2212 = vmatpush3.msra.mxu1 %v2665_v50  ;;  %2170 = vmatprep.subr.mxu0 %v2336_v0  ;;  %v1342_v50 = vand.u32 4294901760, %v2960_v28 }
 0x12c   :  { %2213 = vmatprep.subr.mxu1 %v2336_v0  ;;  %2171 = vmatpush3.msra.mxu0 %v3122_v34  ;;  %v2970_v45 = vsub.f32 %v1195_v18, %v2956_v27 }
 0x12d   :  { %2214 = vmatpush3.msra.mxu1 %v2682_v2  ;;  %2172 = vmatprep.subr.mxu0 %v2336_v0  ;;  %v1343_v20 = vsub.f32 %v2960_v28, %v1342_v50 }
 0x12e   :  { %2215 = vmatprep.subr.mxu1 %v2336_v0  ;;  %2173 = vmatpush3.msra.mxu0 %v3123_v36  ;;  %v1349_v2 = vand.u32 4294901760, %v2970_v45 }
 0x12f   :  { %2216 = vmatpush3.msra.mxu1 %v2695_v14  ;;  %2217 = vmatprep.mubr.msk.f32.mxu1 %vm2337_vm1, %v2336_v0  ;;  %v2985_v14 = vand.u32 4294901760, %v1193_v52  ;;  %v1344_v59 = vand.u32 4294901760, %v1343_v20 }
 0x130   :  { %2174 = vmatprep.subr.mxu0 %v2336_v0  ;;  %2218 = vmatmul.mubr.f32.vlgmr.msra.gmra.mxu1 %v2728_v49  ;;  %v1350_v24 = vsub.f32 %v2970_v45, %v1349_v2 }
 0x131   :  { %2175 = vmatpush3.msra.mxu0 %v3124_v37  ;;  %2182 = vmatprep.mubr.msk.f32.mxu0 %vm2337_vm1, %v2336_v0  ;;  %v2998_v55 = vsub.f32 %v1193_v52, %v2985_v14 }
 0x132   :  { %2176 = vmatprep.subr.mxu0 %v2336_v0  ;;  %2239 = vmatprep.subr.mxu1 %v2336_v0  ;;  %v1351_v60 = vand.u32 4294901760, %v1350_v24 }
 0x133   :  { %2177 = vmatpush3.msra.mxu0 %v3125_v38  ;;  %2255 = vmatprep.mubr.msk.f32.mxu1 %vm2337_vm1, %v2336_v0  ;;  %v1363_v8 = vand.u32 4294901760, %v2998_v55 }
 0x134   :  { %2178 = vmatprep.subr.mxu0 %v2336_v0  ;;  %2240 = vmatpush3.msra.mxu1 %v1316_v10 }
 0x135   :  { %2179 = vmatpush3.msra.mxu0 %v3126_v39  ;;  %2241 = vmatprep.subr.mxu1 %v2336_v0  ;;  %v1364_v19 = vsub.f32 %v2998_v55, %v1363_v8 }
 0x136   :  { %2180 = vmatprep.subr.mxu0 %v2336_v0  ;;  %2242 = vmatpush3.msra.mxu1 %v1323_v21 }
 0x137   :  { %2181 = vmatpush3.msra.mxu0 %v3127_v40  ;;  %2243 = vmatprep.subr.mxu1 %v2336_v0  ;;  %v1365_v25 = vand.u32 4294901760, %v1364_v19 }
 0x138   :  { %2183 = vmatmul.mubr.f32.vlgmr.msra.gmra.mxu0 %v2728_v49  ;;  %2220 = vmatprep.subr.mxu0 %v2336_v0  ;;  %v2972_v49 = vand.u32 4294901760, %v1194_v29 }
 0x139   :  { %2236 = vmatprep.mubr.msk.f32.mxu0 %vm2337_vm1, %v2336_v0  ;;  %2221 = vmatpush3.msra.mxu0 %v2898_v42 }
 0x13a   :  { %2222 = vmatprep.subr.mxu0 %v2336_v0  ;;  %2244 = vmatpush3.msra.mxu1 %v1330_v35  ;;  %v2983_v13 = vsub.f32 %v1194_v29, %v2972_v49 }
 0x13b   :  { %2223 = vmatpush3.msra.mxu0 %v2906_v53  ;;  %2245 = vmatprep.subr.mxu1 %v2336_v0 }
 0x13c   :  { %2224 = vmatprep.subr.mxu0 %v2336_v0  ;;  %2246 = vmatpush3.msra.mxu1 %v1337_v1  ;;  %v1356_v31 = vand.u32 4294901760, %v2983_v13 }
 0x13d   :  { %2225 = vmatpush3.msra.mxu0 %v2917_v58  ;;  %2247 = vmatprep.subr.mxu1 %v2336_v0 }
 0x13e   :  { %2226 = vmatprep.subr.mxu0 %v2336_v0  ;;  %v1357_v7 = vsub.f32 %v2983_v13, %v1356_v31  ;;  %2248 = vmatpush3.msra.mxu1 %v1344_v59 }
 0x13f   :  { %2227 = vmatpush3.msra.mxu0 %v2931_v5  ;;  %2249 = vmatprep.subr.mxu1 %v2336_v0 }
 0x140   :  { %2228 = vmatprep.subr.mxu0 %v2336_v0  ;;  %v1358_v15 = vand.u32 4294901760, %v1357_v7  ;;  %2250 = vmatpush3.msra.mxu1 %v1351_v60 }
 0x141   :  { %2229 = vmatpush3.msra.mxu0 %v2946_v17  ;;  %2251 = vmatprep.subr.mxu1 %v2336_v0 }
 0x142   :  { %2230 = vmatprep.subr.mxu0 %v2336_v0  ;;  %2252 = vmatpush3.msra.mxu1 %v1358_v15 }
 0x143   :  { %2231 = vmatpush3.msra.mxu0 %v2956_v27  ;;  %2253 = vmatprep.subr.mxu1 %v2336_v0 }
 0x144   :  { %2232 = vmatprep.subr.mxu0 %v2336_v0  ;;  %2254 = vmatpush3.msra.mxu1 %v1365_v25 }
 0x145   :  { %2233 = vmatpush3.msra.mxu0 %v2972_v49  ;;  %2277 = vmatprep.subr.mxu1 %v2336_v0 }
 0x146   :  { %2234 = vmatprep.subr.mxu0 %v2336_v0 }
 0x147   :  { %2235 = vmatpush3.msra.mxu0 %v2985_v14 }
 0x148   :  { %2258 = vmatprep.subr.mxu0 %v2336_v0 }
 0x1ae   :  { %v789_v26 = vpop.f32.mrf.mxu1 }
 0x1b0   :  { %v2079_v30 = vpop.f32.mrf.mxu1 }
 0x1b6   :  { %v638_v32 = vpop.f32.mrf.mxu0 }
 0x1b7   :  { %v639_v34 = vadd.f32 %v1756_v3, %v638_v32 }
 0x1b8   :  { %v2044_v33 = vpop.f32.mrf.mxu0 }
 0x1b9   :  { %v790_v37 = vadd.f32 %v789_v26, %v639_v34 }
 0x1ce   :  { %v982_v46 = vpop.f32.mrf.mxu1 }
 0x1d0   :  { %v2149_v48 = vpop.f32.mrf.mxu1 }
 0x1d7   :  { %v893_v47 = vpop.f32.mrf.mxu0 }
 0x1d8   :  { %v894_v39 = vadd.f32 %v893_v47, %v790_v37 }
 0x1d9   :  { %v2114_v9 = vpop.f32.mrf.mxu0 }
 0x1da   :  { %v983_v40 = vadd.f32 %v982_v46, %v894_v39 }
 0x1f0   :  { %v1188_v36 = vpop.f32.mrf.mxu1 }
 0x1f2   :  { %v2219_v38 = vpop.f32.mrf.mxu1 }
 0x1f8   :  { %v1101_v41 = vpop.f32.mrf.mxu0 }
 0x1f9   :  { %v1102_v44 = vadd.f32 %v1101_v41, %v983_v40 }
 0x1fa   :  { %v2184_v54 = vpop.f32.mrf.mxu0 }
 0x1fb   :  { %v1189_v61 = vadd.f32 %v1188_v36, %v1102_v44 }
 0x1fd   :  { %v1192_v62 = vmax.f32 %v1189_v61, 0.0 }
 0x1ff   :  { %v1210_v6 = vsel %vm1208_vm2, %v1192_v62, 0 }
 0x200   :  { %v3018_v10 = vand.u32 4294901760, %v1210_v6 }
 0x202   :  { %v1286_v11 = vsub.f32 %v1210_v6, %v3018_v10  ;;  %2256 = vmatmul.mubr.f32.vlgmr.msra.gmra.mxu1 %v3018_v10 }
 0x203   :  { %2278 = vmatpush3.msra.mxu1 %v2898_v42  ;;  %2293 = vmatprep.mubr.msk.f32.mxu1 %vm2337_vm1, %v2336_v0 }
 0x204   :  { %2279 = vmatprep.subr.mxu1 %v2336_v0  ;;  %v1287_v18 = vand.u32 4294901760, %v1286_v11 }
 0x205   :  { %2280 = vmatpush3.msra.mxu1 %v2906_v53 }
 0x206   :  { %2281 = vmatprep.subr.mxu1 %v2336_v0  ;;  %v1288_v21 = vsub.f32 %v1286_v11, %v1287_v18 }
 0x207   :  { %2282 = vmatpush3.msra.mxu1 %v2917_v58 }
 0x208   :  { %2283 = vmatprep.subr.mxu1 %v2336_v0  ;;  %v1289_v22 = vand.u32 4294901760, %v1288_v21 }
 0x209   :  { %2284 = vmatpush3.msra.mxu1 %v2931_v5 }
 0x20a   :  { %2285 = vmatprep.subr.mxu1 %v2336_v0  ;;  %2237 = vmatmul.mubr.f32.vlgmr.msra.gmra.mxu0 %v1289_v22 }
 0x20b   :  { %2259 = vmatpush3.msra.mxu0 %v2904_v51  ;;  %2286 = vmatpush3.msra.mxu1 %v2946_v17 }
 0x20c   :  { %2260 = vmatprep.subr.mxu0 %v2336_v0  ;;  %2287 = vmatprep.subr.mxu1 %v2336_v0 }
 0x20d   :  { %2261 = vmatpush3.msra.mxu0 %v2915_v57  ;;  %2288 = vmatpush3.msra.mxu1 %v2956_v27 }
 0x20e   :  { %2262 = vmatprep.subr.mxu0 %v2336_v0  ;;  %2289 = vmatprep.subr.mxu1 %v2336_v0 }
 0x20f   :  { %2263 = vmatpush3.msra.mxu0 %v2929_v4  ;;  %2290 = vmatpush3.msra.mxu1 %v2972_v49 }
 0x210   :  { %2264 = vmatprep.subr.mxu0 %v2336_v0  ;;  %2291 = vmatprep.subr.mxu1 %v2336_v0 }
 0x211   :  { %2265 = vmatpush3.msra.mxu0 %v2943_v16  ;;  %2292 = vmatpush3.msra.mxu1 %v2985_v14 }
 0x212   :  { %2266 = vmatprep.subr.mxu0 %v2336_v0  ;;  %2294 = vmatmul.mubr.f32.vlgmr.msra.gmra.mxu1 %v1287_v18 }
 0x213   :  { %2315 = vmatprep.subr.mxu1 %v2336_v0  ;;  %2267 = vmatpush3.msra.mxu0 %v2960_v28 }
 0x214   :  { %2316 = vmatpush3.msra.mxu1 %v2898_v42  ;;  %2268 = vmatprep.subr.mxu0 %v2336_v0 }
 0x215   :  { %2317 = vmatprep.subr.mxu1 %v2336_v0  ;;  %2269 = vmatpush3.msra.mxu0 %v2970_v45 }
 0x216   :  { %2318 = vmatpush3.msra.mxu1 %v2906_v53  ;;  %2270 = vmatprep.subr.mxu0 %v2336_v0 }
 0x217   :  { %2319 = vmatprep.subr.mxu1 %v2336_v0  ;;  %2271 = vmatpush3.msra.mxu0 %v2983_v13 }
 0x218   :  { %2320 = vmatpush3.msra.mxu1 %v2917_v58  ;;  %2272 = vmatprep.subr.mxu0 %v2336_v0 }
 0x219   :  { %2321 = vmatprep.subr.mxu1 %v2336_v0  ;;  %2273 = vmatpush3.msra.mxu0 %v2998_v55 }
 0x21a   :  { %2274 = vmatprep.mubr.msk.f32.mxu0 %vm2337_vm1, %v2336_v0  ;;  %2322 = vmatpush3.msra.mxu1 %v2931_v5  ;;  %v1757_v5 = vld [vmem:[%s3114_s6] ss:$0 sm:$0xff] }
 0x21b   :  { %2275 = vmatmul.mubr.f32.vlgmr.msra.gmra.mxu0 %v1286_v11  ;;  %2296 = vmatprep.subr.mxu0 %v2336_v0 }
 0x21c   :  { %2323 = vmatprep.subr.mxu1 %v2336_v0  ;;  %2297 = vmatpush3.msra.mxu0 %v1314_v56 }
 0x21d   :  { %2324 = vmatpush3.msra.mxu1 %v2946_v17  ;;  %2298 = vmatprep.subr.mxu0 %v2336_v0 }
 0x21e   :  { %2325 = vmatprep.subr.mxu1 %v2336_v0  ;;  %2299 = vmatpush3.msra.mxu0 %v1321_v63 }
 0x21f   :  { %2326 = vmatpush3.msra.mxu1 %v2956_v27  ;;  %2300 = vmatprep.subr.mxu0 %v2336_v0 }
 0x220   :  { %2327 = vmatprep.subr.mxu1 %v2336_v0  ;;  %2301 = vmatpush3.msra.mxu0 %v1328_v12 }
 0x221   :  { %2328 = vmatpush3.msra.mxu1 %v2972_v49  ;;  %2302 = vmatprep.subr.mxu0 %v2336_v0 }
 0x222   :  { %2329 = vmatprep.subr.mxu1 %v2336_v0  ;;  %2303 = vmatpush3.msra.mxu0 %v1335_v23 }
 0x223   :  { %2330 = vmatpush3.msra.mxu1 %v2985_v14  ;;  %2331 = vmatprep.mubr.msk.f32.mxu1 %vm2337_vm1, %v2336_v0 }
 0x224   :  { %2304 = vmatprep.subr.mxu0 %v2336_v0  ;;  %2332 = vmatmul.mubr.f32.vlgmr.msra.gmra.mxu1 %v3018_v10 }
 0x225   :  { %2305 = vmatpush3.msra.mxu0 %v1342_v50  ;;  %2312 = vmatprep.mubr.msk.f32.mxu0 %vm2337_vm1, %v2336_v0 }
 0x226   :  { %2306 = vmatprep.subr.mxu0 %v2336_v0 }
 0x227   :  { %2307 = vmatpush3.msra.mxu0 %v1349_v2 }
 0x228   :  { %2308 = vmatprep.subr.mxu0 %v2336_v0 }
 0x229   :  { %2309 = vmatpush3.msra.mxu0 %v1356_v31 }
 0x22a   :  { %2310 = vmatprep.subr.mxu0 %v2336_v0 }
 0x22b   :  { %2311 = vmatpush3.msra.mxu0 %v1363_v8 }
 0x22c   :  { %2313 = vmatmul.mubr.f32.vlgmr.msra.gmra.mxu0 %v3018_v10 }
 0x2c2   :  { %v1402_v42 = vpop.f32.mrf.mxu1 }
 0x2c4   :  { %v2257_v51 = vpop.f32.mrf.mxu1 }
 0x2ca   :  { %v1291_v53 = vpop.f32.mrf.mxu0 }
 0x2cb   :  { %v1292_v12 = vadd.f32 %v1757_v5, %v1291_v53 }
 0x2cc   :  { %v2238_v56 = vpop.f32.mrf.mxu0 }
 0x2cd   :  { %v1403_v0 = vadd.f32 %v1402_v42, %v1292_v12 }
 0x2d2   :  { %v1571_v57 = vpop.f32.mrf.mxu1 }
 0x2d4   :  { %v2295_v58 = vpop.f32.mrf.mxu1 }
 0x2db   :  { %v1490_v63 = vpop.f32.mrf.mxu0 }
 0x2dc   :  { %v1491_v23 = vadd.f32 %v1490_v63, %v1403_v0 }
 0x2dd   :  { %v2276_v4 = vpop.f32.mrf.mxu0 }
 0x2de   :  { %v1572_v27 = vadd.f32 %v1571_v57, %v1491_v23 }
 0x2e4   :  { %v1745_v16 = vpop.f32.mrf.mxu1 }
 0x2e6   :  { %v2333_v17 = vpop.f32.mrf.mxu1 }
 0x2ec   :  { %v1666_v28 = vpop.f32.mrf.mxu0 }
 0x2ed   :  { %v1667_v29 = vadd.f32 %v1666_v28, %v1572_v27 }
 0x2ee   :  { %v2314_v35 = vpop.f32.mrf.mxu0 }
 0x2ef   :  { %v1746_v43 = vadd.f32 %v1745_v16, %v1667_v29 }
 0x2f1   :  { %1750 = vst.msk [vmem:[%s3115_s7] sm:$0xff] %vm1749_vm3, %v1746_v43 }

</bundles_post_ra>
